<compile_context>
chip_gen: v6e
topology: v6e:2x2x1
jax: 0.10.0
libtpu: 0.0.40
codegen_flags: <defaults>
</compile_context>

<pallas_src>
import functools

import jax
import jax.numpy as jnp
from jax import lax
from jax.experimental import pallas as pl
from jax.experimental.pallas import tpu as pltpu

_LANE = 128
_MAX_TILE_D = 8192  # prefer full-row blocks (contiguous DMA) up to this width


def _sublane_unit(dtype) -> int:
    size = jnp.dtype(dtype).itemsize
    return {4: 8, 2: 16, 1: 32}.get(size, 8)


def _vmem_capacity_bytes() -> int:
    try:
        return int(pltpu.get_tpu_info().vmem_capacity_bytes)
    except Exception:
        return 64 * 1024 * 1024  # conservative: v7x per-TensorCore VMEM


def _default_block_budget_bytes() -> int:
    # Per-input, per-block VMEM budget.  2 inputs x 2 pipeline buffers x budget
    # must leave headroom under the scoped VMEM limit we request below.
    cap = _vmem_capacity_bytes()
    return (8 if cap >= 100 * 1024 * 1024 else 4) * 1024 * 1024


def _bce_logits_kernel(pred_ref, target_ref, out_ref, acc_ref, *,
                       n_rows, n_cols, tile_n, tile_d, acc_rows,
                       mask_rows, mask_cols):
    i = pl.program_id(0)   # row-block axis ("parallel")
    j = pl.program_id(1)   # feature/reduction axis ("arbitrary")

    @pl.when(j == 0)
    def _():
        acc_ref[...] = jnp.zeros_like(acc_ref)

    x = pred_ref[...].astype(jnp.float32)
    y = target_ref[...].astype(jnp.float32)

    # Numerically stable BCE-with-logits (== torch.nn.BCEWithLogitsLoss):
    #   loss = max(x, 0) - x * y + log1p(exp(-|x|))
    loss = jnp.maximum(x, 0.0) - x * y + jnp.log1p(jnp.exp(-jnp.abs(x)))

    # Zero out ragged-edge padding (only emitted when the shape is ragged).
    if mask_rows or mask_cols:
        mask = None
        if mask_rows:
            rows = i * tile_n + lax.broadcasted_iota(jnp.int32, (tile_n, tile_d), 0)
            mask = rows < n_rows
        if mask_cols:
            cols = j * tile_d + lax.broadcasted_iota(jnp.int32, (tile_n, tile_d), 1)
            cmask = cols < n_cols
            mask = cmask if mask is None else jnp.logical_and(mask, cmask)
        loss = jnp.where(mask, loss, 0.0)

    # VPU tree-sum of the loss vreg rows into a small accumulator
    # (no full-block accumulator read-modify-write).
    if acc_rows > 1:
        acc_ref[...] += loss.reshape(tile_n // acc_rows, acc_rows, tile_d).sum(axis=0)
    else:
        acc_ref[...] += loss.sum(axis=0, keepdims=True)

    @pl.when(j == pl.num_programs(1) - 1)
    def _():
        # One small XLU reduce per row block, stored lane-dense (full vst).
        out_ref[...] = jnp.broadcast_to(jnp.sum(acc_ref[...]), (1, 8, _LANE))


def phoc_loss(pred: jax.Array, target: jax.Array, *,
              block_budget_bytes: int | None = None) -> jax.Array:
    """BCEWithLogitsLoss(pred, target) with mean reduction, computed in Pallas."""
    assert pred.shape == target.shape and pred.ndim == 2
    N, D = pred.shape

    if block_budget_bytes is None:
        block_budget_bytes = _default_block_budget_bytes()
    budget_elems = max(block_budget_bytes // 4, 8 * _LANE)  # f32 worst case

    # Lane tile: full rows whenever possible -> one contiguous DMA per block row.
    if D <= _MAX_TILE_D:
        tile_d = D
    else:
        tile_d = _MAX_TILE_D
        for cand in range(_MAX_TILE_D, 1024 - 1, -_LANE):
            if D % cand == 0:          # exact 128-multiple divisor: no masking
                tile_d = cand
                break
    grid_d = pl.cdiv(D, tile_d)
    mask_cols = (D % tile_d) != 0

    # Row tile: as many rows as the per-input VMEM budget allows, in units of
    # the dtype's sublane packing (8 f32 / 16 bf16 / 32 int8).
    sub = max(_sublane_unit(pred.dtype), _sublane_unit(target.dtype))
    cap_n = max(budget_elems // tile_d, sub)
    if N <= cap_n:
        tile_n = N                     # full dim: always a legal block shape
    else:
        tile_n = max((cap_n // sub) * sub, sub)
    grid_n = pl.cdiv(N, tile_n)
    mask_rows = (N % tile_n) != 0

    acc_rows = 8 if tile_n % 8 == 0 else 1

    itemsize = jnp.dtype(pred.dtype).itemsize + jnp.dtype(target.dtype).itemsize
    cost = pl.CostEstimate(
        flops=7 * N * D,
        transcendentals=2 * N * D,
        bytes_accessed=itemsize * N * D + grid_n * 8 * _LANE * 4,
    )

    # Explicit scoped-VMEM limit: 2 inputs x 2 buffers x budget + headroom,
    # never above the chip's (per-core) VMEM capacity.
    vmem_limit = int(min(_vmem_capacity_bytes(),
                         4 * block_budget_bytes + 16 * 1024 * 1024))

    kernel = functools.partial(
        _bce_logits_kernel,
        n_rows=N, n_cols=D, tile_n=tile_n, tile_d=tile_d,
        acc_rows=acc_rows, mask_rows=mask_rows, mask_cols=mask_cols,
    )

    partial_sums = pl.pallas_call(
        kernel,
        out_shape=jax.ShapeDtypeStruct((grid_n, 8, _LANE), jnp.float32),
        grid_spec=pltpu.PrefetchScalarGridSpec(
            num_scalar_prefetch=0,
            grid=(grid_n, grid_d),
            in_specs=[
                pl.BlockSpec((tile_n, tile_d), lambda i, j: (i, j)),
                pl.BlockSpec((tile_n, tile_d), lambda i, j: (i, j)),
            ],
            out_specs=pl.BlockSpec((1, 8, _LANE), lambda i, j: (i, 0, 0)),
            scratch_shapes=[pltpu.VMEM((acc_rows, tile_d), jnp.float32)],
        ),
        compiler_params=pltpu.CompilerParams(
            # Row blocks are independent -> shard across TensorCores (v7x
            # megacore); the feature/reduction axis stays sequential.
            dimension_semantics=("parallel", "arbitrary"),
            vmem_limit_bytes=vmem_limit,
        ),
        cost_estimate=cost,
    )(pred, target)

    total = jnp.sum(partial_sums[:, 0, 0])
    return total / jnp.float32(N * D)


def _reference(pred, target):
    x = pred.astype(jnp.float32)
    y = target.astype(jnp.float32)
    loss = jnp.maximum(x, 0.0) - x * y + jnp.log1p(jnp.exp(-jnp.abs(x)))
    return jnp.mean(loss)


if __name__ == "__main__":
    key = jax.random.PRNGKey(0)
    k_pred, k_tgt = jax.random.split(key)

    # 1) Small PHOC-like case: batch=8, 512-dim logits (single block).
    N, D = 8, 512
    pred = jax.random.normal(k_pred, (N, D), dtype=jnp.float32)
    target = (jax.random.uniform(k_tgt, (N, D)) > 0.5).astype(jnp.float32)
    loss = jax.block_until_ready(phoc_loss(pred, target))
    ref = jax.block_until_ready(_reference(pred, target))
    assert jnp.allclose(loss, ref, rtol=1e-5, atol=1e-5), (loss, ref)

    # 2) Real PHOC width (604 = not a multiple of 128), batch not a multiple of 8.
    N2, D2 = 20, 604
    pred2 = jax.random.normal(k_pred, (N2, D2), dtype=jnp.float32)
    target2 = (jax.random.uniform(k_tgt, (N2, D2)) > 0.5).astype(jnp.float32)
    loss2 = jax.block_until_ready(phoc_loss(pred2, target2))
    ref2 = jax.block_until_ready(_reference(pred2, target2))
    assert jnp.allclose(loss2, ref2, rtol=1e-5, atol=1e-5), (loss2, ref2)

    # 3) bf16 inputs with a tiny forced block budget: exercises the multi-
    #    row-block, ragged-edge (masked) path at small scale.
    N3, D3 = 44, 604
    pred3 = jax.random.normal(k_pred, (N3, D3), dtype=jnp.bfloat16)
    target3 = (jax.random.uniform(k_tgt, (N3, D3)) > 0.5).astype(jnp.bfloat16)
    loss3 = jax.block_until_ready(
        phoc_loss(pred3, target3, block_budget_bytes=64 * 1024))
    ref3 = jax.block_until_ready(_reference(pred3, target3))
    assert jnp.allclose(loss3, ref3, rtol=1e-4, atol=1e-4), (loss3, ref3)

    print("KERNEL_OK")
</pallas_src>

<mosaic_0001>
module attributes {stable_mosaic.version = 11 : i64} {
  func.func @_bce_logits_kernel(%arg0: i32, %arg1: i32, %arg2: memref<8x512xf32, #tpu.memory_space<vmem>>, %arg3: memref<8x512xf32, #tpu.memory_space<vmem>>, %arg4: memref<1x8x128xf32, #tpu.memory_space<vmem>>, %arg5: memref<8x512xf32, #tpu.memory_space<vmem>>) attributes {dimension_semantics = [#tpu.dimension_semantics<parallel>, #tpu.dimension_semantics<arbitrary>], iteration_bounds = array<i64: 1, 1>, scalar_prefetch = 0 : i64, scratch_operands = 1 : i64, tpu.core_type = #tpu.core_type<tc>, window_params = [{transform_indices = @transform_0, window_bounds = array<i64: 8, 512>}, {transform_indices = @transform_1, window_bounds = array<i64: 8, 512>}, {transform_indices = @transform_2, window_bounds = array<i64: 1, 8, 128>}]} {
    %c0_i32 = arith.constant 0 : i32
    %0 = arith.cmpi eq, %arg1, %c0_i32 : i32
    %1 = arith.extui %0 : i1 to i32
    %c0_i32_0 = arith.constant 0 : i32
    %2 = arith.cmpi ne, %1, %c0_i32_0 : i32
    scf.if %2 {
      %cst_12 = arith.constant 0.000000e+00 : f32
      %23 = vector.broadcast %cst_12 : f32 to vector<8x512xf32>
      %c0_13 = arith.constant 0 : index
      %c0_14 = arith.constant 0 : index
      %24 = vector.load %arg5[%c0_13, %c0_14] : memref<8x512xf32, #tpu.memory_space<vmem>>, vector<8x512xf32>
      tpu.vector_store %arg5[%c0_13, %c0_14], %23 {strides = array<i32>} : memref<8x512xf32, #tpu.memory_space<vmem>>, vector<8x512xf32>,
    } else {
    }
    %c0 = arith.constant 0 : index
    %c0_1 = arith.constant 0 : index
    %3 = vector.load %arg2[%c0, %c0_1] : memref<8x512xf32, #tpu.memory_space<vmem>>, vector<8x512xf32>
    %c0_2 = arith.constant 0 : index
    %c0_3 = arith.constant 0 : index
    %4 = vector.load %arg3[%c0_2, %c0_3] : memref<8x512xf32, #tpu.memory_space<vmem>>, vector<8x512xf32>
    %cst = arith.constant 0.000000e+00 : f32
    %5 = vector.broadcast %cst : f32 to vector<8x512xf32>
    %6 = arith.maximumf %3, %5 : vector<8x512xf32>
    %7 = arith.mulf %3, %4 : vector<8x512xf32>
    %8 = arith.subf %6, %7 : vector<8x512xf32>
    %9 = math.absf %3 : vector<8x512xf32>
    %cst_4 = arith.constant 0.000000e+00 : f32
    %10 = vector.broadcast %cst_4 : f32 to vector<8x512xf32>
    %11 = arith.subf %10, %9 : vector<8x512xf32>
    %12 = math.exp %11 : vector<8x512xf32>
    %13 = math.log1p %12 : vector<8x512xf32>
    %14 = arith.addf %8, %13 : vector<8x512xf32>
    %c0_5 = arith.constant 0 : index
    %c0_6 = arith.constant 0 : index
    %15 = vector.load %arg5[%c0_5, %c0_6] : memref<8x512xf32, #tpu.memory_space<vmem>>, vector<8x512xf32>
    %16 = vector.shape_cast %14 : vector<8x512xf32> to vector<1x8x512xf32>
    %cst_7 = arith.constant dense<0.000000e+00> : vector<8x512xf32>
    %17 = vector.multi_reduction <add>, %16, %cst_7 [0] : vector<1x8x512xf32> to vector<8x512xf32>
    %18 = arith.addf %15, %17 : vector<8x512xf32>
    %c0_8 = arith.constant 0 : index
    %c0_9 = arith.constant 0 : index
    %19 = vector.load %arg5[%c0_8, %c0_9] : memref<8x512xf32, #tpu.memory_space<vmem>>, vector<8x512xf32>
    tpu.vector_store %arg5[%c0_8, %c0_9], %18 {strides = array<i32>} : memref<8x512xf32, #tpu.memory_space<vmem>>, vector<8x512xf32>,
    %c0_i32_10 = arith.constant 0 : i32
    %20 = arith.cmpi eq, %arg1, %c0_i32_10 : i32
    %21 = arith.extui %20 : i1 to i32
    %c0_i32_11 = arith.constant 0 : i32
    %22 = arith.cmpi ne, %21, %c0_i32_11 : i32
    scf.if %22 {
      %c0_12 = arith.constant 0 : index
      %c0_13 = arith.constant 0 : index
      %23 = vector.load %arg5[%c0_12, %c0_13] : memref<8x512xf32, #tpu.memory_space<vmem>>, vector<8x512xf32>
      %24 = vector.shape_cast %23 : vector<8x512xf32> to vector<1x8x512xf32>
      %cst_14 = arith.constant dense<0.000000e+00> : vector<1xf32>
      %25 = vector.multi_reduction <add>, %24, %cst_14 [1, 2] : vector<1x8x512xf32> to vector<1xf32>
      %26 = vector.shape_cast %25 : vector<1xf32> to vector<1x1x1xf32>
      %27 = vector.extract %26[0, 0, 0] : f32 from vector<1x1x1xf32>
      %28 = vector.broadcast %27 : f32 to vector<1x8x128xf32>
      %c0_15 = arith.constant 0 : index
      %c0_16 = arith.constant 0 : index
      %c0_17 = arith.constant 0 : index
      %29 = vector.load %arg4[%c0_15, %c0_16, %c0_17] : memref<1x8x128xf32, #tpu.memory_space<vmem>>, vector<1x8x128xf32>
      tpu.vector_store %arg4[%c0_15, %c0_16, %c0_17], %28 {strides = array<i32>} : memref<1x8x128xf32, #tpu.memory_space<vmem>>, vector<1x8x128xf32>,
    } else {
    }
    return
  }
  func.func @transform_0(%arg0: i32, %arg1: i32) -> (i32, i32) {
    %c0_i32 = arith.constant 0 : i32
    return %arg0, %arg1 : i32, i32
  }
  func.func @transform_1(%arg0: i32, %arg1: i32) -> (i32, i32) {
    %c0_i32 = arith.constant 0 : i32
    return %arg0, %arg1 : i32, i32
  }
  func.func @transform_2(%arg0: i32, %arg1: i32) -> (i32, i32, i32) {
    %c0_i32 = arith.constant 0 : i32
    %c0_i32_0 = arith.constant 0 : i32
    %c0_i32_1 = arith.constant 0 : i32
    return %arg0, %c0_i32, %c0_i32_0 : i32, i32, i32
  }
}

</mosaic_0001>

<bundles_post_ra>
// kernel: tpu_custom_call.1
= control target key start
LH: loop header
LB: loop body
LE: loop exit
PB: predicated region body
PF: predicated region fallthrough
CT: control target
= control target key end

     0   :  { %7 = vsyncpa [#allocation4], 0  ;;  %s309_s0 = inlined_call_operand.hbm [shape: f32[8,512], index: 0, kind: input, shape index: {}]   ;;  %s310_s1 = inlined_call_operand.hbm [shape: f32[8,512], index: 1, kind: input, shape index: {}]   ;;  %s311_s2 = inlined_call_operand.hbm [shape: f32[1,8,128], index: 2, kind: output, shape index: {}]  }
   0x1   :  { %8 = vsyncpa [#allocation7], 0 }
   0x2   :  { %9 = vsyncpa [#allocation5], 0  ;;  %s260_s9 = smov [#allocation3]   ;;  %s261_s11 = smov [#allocation6]  }
   0x3   :  { %s16_s10 = sshll.u32 %s260_s9, 4  ;;  %s26_s12 = sshll.u32 %s261_s11, 4  ;;  %s17_s10 = int_to_ptr.vmem [resolvable:$true] %s16_s10  ;;  %s27_s12 = int_to_ptr.vmem [resolvable:$true] %s26_s12 }
   0x4   :  { %s202_s13 = scalar_lea.vmem %s17_s10, 512  ;;  %p207_p1 = scmp.lt.s32.totalorder %s17_s10, %s17_s10 }
   0x5   :  { %p203_p0 = scmp.ne.s32.totalorder %s17_s10, %s202_s13  ;;  %p208_p2 = scmp.lt.s32.totalorder %s202_s13, %s202_s13 }
   0x7   :  { %p209_p3 = por %p208_p2, %p207_p1 }
   0x9   :  { %p210_p4 = pnand %p209_p3, %p203_p0 }
   0xb   :  { %213 = shalt.err (!%p210_p4)
}
   0xc   :  { %19 = dma.hbm_to_vmem [thread:$0]  %s309_s0, 512, %s17_s10, [#allocation4]  }
   0xd   :  { %s222_s16 = scalar_lea.vmem %s27_s12, 512  ;;  %p227_p6 = scmp.lt.s32.totalorder %s27_s12, %s27_s12 }
   0xe   :  { %p223_p5 = scmp.ne.s32.totalorder %s27_s12, %s222_s16  ;;  %p228_p7 = scmp.lt.s32.totalorder %s222_s16, %s222_s16 }
  0x10   :  { %p229_p8 = por %p228_p7, %p227_p6 }
  0x12   :  { %p230_p9 = pnand %p229_p8, %p223_p5 }
  0x14   :  { %233 = shalt.err (!%p230_p9)
}
  0x15   :  { %29 = dma.hbm_to_vmem [thread:$0]  %s310_s1, 512, %s27_s12, [#allocation7]  }
  0x16   :  { %254 = dma.done.wait [#allocation4], 512  }
  0x17   :  { %255 = vsyncadd [#allocation4], 4294966784 }
  0x18   :  { %256 = dma.done.wait [#allocation7], 512  }
  0x19   :  { %257 = vsyncadd [#allocation7], 4294966784  ;;  %v44_v0 = vld [vmem:[#allocation3] sm:$0xff]  ;;  %v45_v1 = vld [vmem:[#allocation3 + $0x8] sm:$0xff]  ;;  %s262_s0 = smov [#allocation8]  }
  0x1a   :  { %v284_v2 = vld [vmem:[#allocation3 + $0x10] sm:$0xff]  ;;  %v286_v3 = vld [vmem:[#allocation3 + $0x18] sm:$0xff]  ;;  %v64_v4 = vand.u32 2147483647, %v44_v0  ;;  %v65_v5 = vand.u32 2147483647, %v45_v1 }
  0x1b   :  { %v66_v6 = vand.u32 2147483647, %v284_v2  ;;  %v67_v7 = vand.u32 2147483647, %v286_v3  ;;  %v48_v26 = vld [vmem:[#allocation6] sm:$0xff]  ;;  %v49_v28 = vld [vmem:[#allocation6 + $0x8] sm:$0xff] }
  0x1c   :  { %v68_v8 = vsub.f32 0.0, %v64_v4  ;;  %v69_v9 = vsub.f32 0.0, %v65_v5  ;;  %v50_v29 = vld [vmem:[#allocation6 + $0x10] sm:$0xff]  ;;  %v51_v32 = vld [vmem:[#allocation6 + $0x18] sm:$0xff]  ;;  %v52_v33 = vmax.f32 %v44_v0, 0.0  ;;  %v56_v34 = vmul.f32 %v48_v26, %v44_v0  ;;  %s163_s1 = sshll.u32 %s262_s0, 4  ;;  %s164_s1 = int_to_ptr.vmem [resolvable:$true] %s163_s1 }
  0x1d   :  { %v70_v10 = vsub.f32 0.0, %v66_v6  ;;  %v71_v11 = vsub.f32 0.0, %v67_v7  ;;  %v53_v37 = vmax.f32 %v45_v1, 0.0  ;;  %v57_v38 = vmul.f32 %v49_v28, %v45_v1  ;;  %s234_s20 = scalar_lea.vmem %s164_s1, 128  ;;  %p239_p11 = scmp.lt.s32.totalorder %s164_s1, %s164_s1 }
  0x1e   :  { %v72_v12 = vmul.f32 1.442695, %v68_v8  ;;  %v74_v13 = vmul.f32 1.442695, %v69_v9  ;;  %v54_v41 = vmax.f32 %v284_v2, 0.0  ;;  %v58_v42 = vmul.f32 %v50_v29, %v284_v2  ;;  %p235_p10 = scmp.ne.s32.totalorder %s164_s1, %s234_s20  ;;  %p240_p12 = scmp.lt.s32.totalorder %s234_s20, %s234_s20 }
  0x1f   :  { %v76_v14 = vmul.f32 1.442695, %v70_v10  ;;  %v78_v15 = vmul.f32 1.442695, %v71_v11  ;;  %v55_v44 = vmax.f32 %v286_v3, 0.0  ;;  %v59_v45 = vmul.f32 %v51_v32, %v286_v3 }
  0x20   :  { %178 = vpow2.f32 %v72_v12  ;;  %v60_v49 = vsub.f32 %v52_v33, %v56_v34  ;;  %v61_v54 = vsub.f32 %v53_v37, %v57_v38  ;;  %v62_v59 = vsub.f32 %v54_v41, %v58_v42  ;;  %p241_p13 = por %p240_p12, %p239_p11 }
  0x21   :  { %180 = vpow2.f32 %v74_v13  ;;  %v63_v1 = vsub.f32 %v55_v44, %v59_v45 }
  0x22   :  { %182 = vpow2.f32 %v76_v14  ;;  %p242_p0 = pnand %p241_p13, %p235_p10 }
  0x23   :  { %184 = vpow2.f32 %v78_v15 }
  0x2d   :  { %v179_v16 = vpop.eup %178 }
  0x2e   :  { %v181_v17 = vpop.eup %180  ;;  %v80_v18 = vadd.f32 1.0, %v179_v16  ;;  %v83_v24 = vmul.f32 -0.5, %v179_v16  ;;  %v86_v35 = vand.u32 2147483647, %v179_v16 }
  0x2f   :  { %v183_v19 = vpop.eup %182  ;;  %v89_v20 = vadd.f32 1.0, %v181_v17  ;;  %v92_v25 = vmul.f32 -0.5, %v181_v17  ;;  %v95_v39 = vand.u32 2147483647, %v181_v17 }
  0x30   :  { %v185_v21 = vpop.eup %184  ;;  %186 = vlog2.f32 %v80_v18  ;;  %v98_v22 = vadd.f32 1.0, %v183_v19  ;;  %v101_v27 = vmul.f32 -0.5, %v183_v19  ;;  %v84_v30 = vadd.f32 1.0, %v83_v24 }
  0x31   :  { %188 = vlog2.f32 %v89_v20  ;;  %v107_v23 = vadd.f32 1.0, %v185_v21  ;;  %v110_v31 = vmul.f32 -0.5, %v185_v21  ;;  %v93_v36 = vadd.f32 1.0, %v92_v25 }
  0x32   :  { %190 = vlog2.f32 %v98_v22  ;;  %v102_v40 = vadd.f32 1.0, %v101_v27  ;;  %v104_v43 = vand.u32 2147483647, %v183_v19  ;;  %v85_v46 = vmul.f32 %v179_v16, %v84_v30 }
  0x33   :  { %192 = vlog2.f32 %v107_v23  ;;  %v111_v47 = vadd.f32 1.0, %v110_v31  ;;  %vm294_vm0 = vcmp.lt.f32.partialorder %v86_v35, 0.0004427343  ;;  %v94_v51 = vmul.f32 %v181_v17, %v93_v36 }
  0x34   :  { %v113_v52 = vand.u32 2147483647, %v185_v21  ;;  %vm298_vm1 = vcmp.lt.f32.partialorder %v95_v39, 0.0004427343  ;;  %v103_v57 = vmul.f32 %v183_v19, %v102_v40  ;;  %vm105_vm2 = vcmp.lt.f32.partialorder %v104_v43, 0.0004427343 }
  0x35   :  { %v112_v63 = vmul.f32 %v185_v21, %v111_v47 }
  0x36   :  { %vm114_vm3 = vcmp.lt.f32.partialorder %v113_v52, 0.0004427343 }
  0x3d   :  { %v187_v48 = vpop.eup %186 }
  0x3e   :  { %v189_v53 = vpop.eup %188  ;;  %v82_v55 = vmul.f32 0.6931472, %v187_v48 }
  0x3f   :  { %v191_v58 = vpop.eup %190  ;;  %v91_v60 = vmul.f32 0.6931472, %v189_v53 }
  0x40   :  { %v88_v61 = vsel %vm294_vm0, %v85_v46, %v82_v55  ;;  %v100_v62 = vmul.f32 0.6931472, %v191_v58  ;;  %v193_v0 = vpop.eup %192 }
  0x41   :  { %v97_v2 = vsel %vm298_vm1, %v94_v51, %v91_v60  ;;  %v116_v3 = vadd.f32 %v88_v61, %v60_v49  ;;  %v109_v5 = vmul.f32 0.6931472, %v193_v0 }
  0x42   :  { %v106_v4 = vsel %vm105_vm2, %v103_v57, %v100_v62  ;;  %v117_v6 = vadd.f32 %v97_v2, %v61_v54 }
  0x43   :  { %v118_v7 = vadd.f32 %v106_v4, %v62_v59  ;;  %v115_v8 = vsel %vm114_vm3, %v112_v63, %v109_v5 }
  0x44   :  { %v143_v9 = vadd.f32 %v117_v6, %v116_v3  ;;  %v119_v10 = vadd.f32 %v115_v8, %v63_v1 }
  0x46   :  { %v144_v11 = vadd.f32 %v143_v9, %v118_v7 }
  0x48   :  { %v145_v12 = vadd.f32 %v144_v11, %v119_v10 }
  0x4a   :  { %146 = vadd.xlane.f32.xlu0 %v145_v12 }
  0xd3   :  { %v147_v13 = vpop.xlane.xlu0 %146 }
  0xd4   :  { %v148_v14 = vrot.slane %v147_v13, 4 }
  0xd6   :  { %v149_v15 = vadd.f32 %v148_v14, %v147_v13 }
  0xd8   :  { %v150_v16 = vrot.slane %v149_v15, 2 }
  0xda   :  { %v151_v17 = vadd.f32 %v150_v16, %v149_v15 }
  0xdc   :  { %v152_v18 = vrot.slane %v151_v17, 1 }
  0xde   :  { %v153_v19 = vadd.f32 %v152_v18, %v151_v17 }
  0xe0   :  { %173 = vpush %v153_v19 }
 0x111   :  { %s174_s19 = spop %173 }
 0x112   :  { %v155_v20 = vstv %s174_s19 }
 0x113   :  { %156 = vst [vmem:[#allocation8] sm:$0xff] %v155_v20 }
 0x114   :  { %245 = shalt.err (!%p242_p0)
}
 0x115   :  { %166 = dma.vmem_to_hbm [thread:$0]  %s164_s1, 128, %s311_s2, [#allocation5]  }
 0x116   :  { %258 = dma.done.wait [#allocation5], 128  }
 0x117   :  { %259 = vsyncadd [#allocation5], 4294967168 }
 0x118   :  { %170 = vsyncpa [#allocation4], 1 }
 0x119   :  { %171 = vsyncpa [#allocation7], 1 }
 0x11a   :  { %172 = vsyncpa [#allocation5], 1 }

</bundles_post_ra>
